<compile_context>
chip_gen: v7x
topology: tpu7x:2x2x1
jax: 0.10.0
libtpu: 0.0.40
codegen_flags: <defaults>
</compile_context>

<pallas_src>
import jax
import jax.numpy as jnp
from jax.experimental import pallas as pl
from jax.experimental.pallas import tpu as pltpu


def _make_round_kernel(th: float):
    def kernel(x_ref, o_ref):
        # Elementwise compare + cast; VPU-trivial, kernel is HBM-bound.
        o_ref[...] = (x_ref[...] > th).astype(o_ref.dtype)

    return kernel


def _sublane_multiple(dtype) -> int:
    """Row-block multiple so the input block is a whole number of packed vregs."""
    itemsize = jnp.dtype(dtype).itemsize
    return max(8, 8 * (4 // max(1, itemsize)))  # f32:8, bf16:16, int8/fp8:32


def _block_bytes_target() -> int:
    """Per-array per-block byte target, gated by TPU generation."""
    try:
        kind = jax.devices()[0].device_kind.lower()
    except Exception:
        kind = ""
    if "v5" in kind:
        # Keep 2 MiB blocks on v5e: 2 arrays x 2 bufs x 2 MiB = 8 MiB, already
        # ~85% of the streaming plateau there.
        return 2 << 20
    # v6e / v7x: bigger blocks amortize the ~0.35us per-step overhead against
    # much faster HBM; 2 x 2 x 4 MiB = 16 MiB, well under the raised limit.
    return 4 << 20


def round1_forward(x: jax.Array, th: float = 0.5) -> jax.Array:
    """Pallas implementation of Round1.forward: (x > th).astype(float32)."""
    orig_shape = x.shape
    total = int(x.size)
    if total == 0:
        return jnp.zeros(orig_shape, jnp.float32)

    in_itemsize = jnp.dtype(x.dtype).itemsize
    sub = _sublane_multiple(x.dtype)
    blk_bytes = _block_bytes_target()
    elem_bytes = max(4, in_itemsize)  # f32 output dominates sizing for narrow inputs

    # ---- copy-free 2-D view ----------------------------------------------
    if total % 128 == 0:
        # Lane-dense: largest multiple-of-128 divisor of `total`, capped at 8192,
        # so output stores are unmasked full-lane vst's.
        cls = 128
        max_m = min(total // 128, 64)
        for m in range(max_m, 0, -1):
            if total % (128 * m) == 0:
                cls = 128 * m
                break
    else:
        # Ragged element count: keep the natural trailing dim (no pad, no slice);
        # edge/lane masking inside the kernel handles the remainder.
        cls = int(orig_shape[-1]) if len(orig_shape) >= 1 else 1
        cls = max(cls, 1)
    rows = total // cls
    x2d = x.reshape(rows, cls)

    # ---- row tiling --------------------------------------------------------
    target_rows = max(sub, (blk_bytes // (cls * elem_bytes)) // sub * sub)
    tm = rows if rows <= target_rows else target_rows
    num_blocks = pl.cdiv(rows, tm)

    # Guarantee >=2 grid steps for arrays above ~1 MiB so both v7x TensorCores
    # get work (no effect on single-TC v5e/v6e correctness or layout).
    total_bytes = total * elem_bytes
    if num_blocks == 1 and total_bytes > (1 << 20) and rows >= 2 * sub:
        tm = (((rows + 1) // 2) + sub - 1) // sub * sub  # ~half, multiple of sub
        num_blocks = pl.cdiv(rows, tm)

    cost = pl.CostEstimate(
        flops=total,
        transcendentals=0,
        bytes_accessed=total * in_itemsize + total * 4,
    )

    out2d = pl.pallas_call(
        _make_round_kernel(float(th)),
        out_shape=jax.ShapeDtypeStruct((rows, cls), jnp.float32),
        grid_spec=pl.GridSpec(
            grid=(num_blocks,),
            in_specs=[pl.BlockSpec((tm, cls), lambda i: (i, 0))],
            out_specs=pl.BlockSpec((tm, cls), lambda i: (i, 0)),
        ),
        compiler_params=pltpu.CompilerParams(
            dimension_semantics=("parallel",),
            vmem_limit_bytes=40 << 20,
        ),
        cost_estimate=cost,
    )(x2d)

    return out2d.reshape(orig_shape)


if __name__ == "__main__":
    # TODO(synk): backward (straight-through estimator) is not implemented; forward only.
    key = jax.random.PRNGKey(0)

    # Primary check: small NCHW input consistent with the PyTorch module.
    x = jax.random.uniform(key, (2, 4, 16, 16), dtype=jnp.float32)
    y = round1_forward(x, th=0.5)
    jax.block_until_ready(y)
    y_ref = (x > 0.5).astype(jnp.float32)
    assert y.shape == x.shape and y.dtype == jnp.float32
    assert bool(jnp.all(y == y_ref))

    # Secondary check: element count not divisible by 128 (ragged, copy-free path).
    x2 = jax.random.uniform(jax.random.PRNGKey(1), (2, 3, 7, 7), dtype=jnp.float32)
    y2 = round1_forward(x2, th=0.5)
    jax.block_until_ready(y2)
    y2_ref = (x2 > 0.5).astype(jnp.float32)
    assert y2.shape == x2.shape and y2.dtype == jnp.float32
    assert bool(jnp.all(y2 == y2_ref))

    # Tertiary check: bf16 input exercises the sublane-packing-aware tiling.
    x3 = jax.random.uniform(jax.random.PRNGKey(2), (4, 8, 32), dtype=jnp.bfloat16)
    y3 = round1_forward(x3, th=0.5)
    jax.block_until_ready(y3)
    y3_ref = (x3 > 0.5).astype(jnp.float32)
    assert y3.shape == x3.shape and y3.dtype == jnp.float32
    assert bool(jnp.all(y3 == y3_ref))

    print("KERNEL_OK")
</pallas_src>

<mosaic_0001>
module attributes {stable_mosaic.version = 11 : i64} {
  func.func @kernel(%arg0: i32, %arg1: memref<1x2048xf32, #tpu.memory_space<vmem>>, %arg2: memref<1x2048xf32, #tpu.memory_space<vmem>>) attributes {dimension_semantics = [#tpu.dimension_semantics<parallel>], iteration_bounds = array<i64: 1>, scalar_prefetch = 0 : i64, scratch_operands = 0 : i64, tpu.core_type = #tpu.core_type<tc>, window_params = [{transform_indices = @transform_0, window_bounds = array<i64: 1, 2048>}, {transform_indices = @transform_1, window_bounds = array<i64: 1, 2048>}]} {
    %c0 = arith.constant 0 : index
    %c0_0 = arith.constant 0 : index
    %0 = vector.load %arg1[%c0, %c0_0] : memref<1x2048xf32, #tpu.memory_space<vmem>>, vector<1x2048xf32>
    %cst = arith.constant 5.000000e-01 : f32
    %1 = vector.broadcast %cst : f32 to vector<1x2048xf32>
    %2 = arith.cmpf ogt, %0, %1 : vector<1x2048xf32>
    %3 = arith.extui %2 : vector<1x2048xi1> to vector<1x2048xi32>
    %4 = arith.sitofp %3 : vector<1x2048xi32> to vector<1x2048xf32>
    %c0_1 = arith.constant 0 : index
    %c0_2 = arith.constant 0 : index
    %5 = vector.load %arg2[%c0_1, %c0_2] : memref<1x2048xf32, #tpu.memory_space<vmem>>, vector<1x2048xf32>
    tpu.vector_store %arg2[%c0_1, %c0_2], %4 {strides = array<i32>} : memref<1x2048xf32, #tpu.memory_space<vmem>>, vector<1x2048xf32>,
    return
  }
  func.func @transform_0(%arg0: i32) -> (i32, i32) {
    %c0_i32 = arith.constant 0 : i32
    %c0_i32_0 = arith.constant 0 : i32
    return %arg0, %c0_i32 : i32, i32
  }
  func.func @transform_1(%arg0: i32) -> (i32, i32) {
    %c0_i32 = arith.constant 0 : i32
    %c0_i32_0 = arith.constant 0 : i32
    return %arg0, %c0_i32 : i32, i32
  }
}

</mosaic_0001>

<bundles_post_ra>
// kernel: tpu_custom_call.1
= control target key start
LH: loop header
LB: loop body
LE: loop exit
PB: predicated region body
PF: predicated region fallthrough
CT: control target
= control target key end

     0   :  { %6 = vsyncpa [#allocation3], 0  ;;  %s136_s0 = inlined_call_operand.hbm [shape: f32[1,2048], index: 0, kind: input, shape index: {}]   ;;  %s137_s1 = inlined_call_operand.hbm [shape: f32[1,2048], index: 1, kind: output, shape index: {}]  }
   0x1   :  { %7 = vsyncpa [#allocation4], 0  ;;  %s99_s6 = smov [#allocation2]   ;;  %s51_s10 = scalar_lea.hbm %s136_s0, 256 }
   0x2   :  { %s14_s7 = sshll.u32 %s99_s6, 4  ;;  %p52_p0 = scmp.ne.s32.totalorder %s136_s0, %s51_s10  ;;  %s15_s7 = int_to_ptr.vmem [resolvable:$true] %s14_s7 }
   0x3   :  { %p55_p1 = scmp.lt.u32.totalorder %s51_s10, %s136_s0 }
   0x5   :  { %p57_p2 = pnand %p55_p1, %p52_p0 }
   0x7   :  { %60 = shalt.err (!%p57_p2)
}
   0x8   :  { %s61_s15 = scalar_lea.vmem %s15_s7, 256  ;;  %p66_p4 = scmp.lt.s32.totalorder %s15_s7, %s15_s7 }
   0x9   :  { %p62_p3 = scmp.ne.s32.totalorder %s15_s7, %s61_s15  ;;  %p67_p5 = scmp.lt.s32.totalorder %s61_s15, %s61_s15 }
   0xb   :  { %p68_p6 = por %p67_p5, %p66_p4 }
   0xd   :  { %p69_p7 = pnand %p68_p6, %p62_p3 }
   0xf   :  { %72 = shalt.err (!%p69_p7)
}
  0x10   :  { %17 = dma.hbm_to_vmem [thread:$0]  %s136_s0, 256, %s15_s7, [#allocation3]  }
  0x11   :  { %95 = dma.done.wait [#allocation3], 256  }
  0x12   :  { %96 = vsyncadd [#allocation3], 4294967040  ;;  %s100_s18 = smov [#allocation5]   ;;  %v21_v0 = vld [vmem:[#allocation2] sm:$0xff]  ;;  %v22_v1 = vld [vmem:[#allocation2 + $0x8] sm:$0xff]  ;;  %v101_v2 = vmov 0.0  }
  0x13   :  { %s37_s19 = sshll.u32 %s100_s18, 4  ;;  %vm23_vm0 = vcmp.gt.f32.partialorder %v21_v0, 0.5  ;;  %vm24_vm1 = vcmp.gt.f32.partialorder %v22_v1, 0.5  ;;  %s38_s19 = int_to_ptr.vmem [resolvable:$true] %s37_s19 }
  0x14   :  { %v46_v3 = vsel %vm23_vm0, 1.0, %v101_v2  ;;  %v47_v4 = vsel %vm24_vm1, 1.0, %v101_v2  ;;  %s73_s20 = scalar_lea.vmem %s38_s19, 256  ;;  %p78_p9 = scmp.lt.s32.totalorder %s38_s19, %s38_s19 }
  0x15   :  { %29 = vst [vmem:[#allocation5] sm:$0xff] %v46_v3  ;;  %30 = vst [vmem:[#allocation5 + $0x8] sm:$0xff] %v47_v4  ;;  %p74_p8 = scmp.ne.s32.totalorder %s38_s19, %s73_s20  ;;  %p79_p10 = scmp.lt.s32.totalorder %s73_s20, %s73_s20 }
  0x17   :  { %p80_p11 = por %p79_p10, %p78_p9 }
  0x19   :  { %p81_p12 = pnand %p80_p11, %p74_p8 }
  0x1b   :  { %84 = shalt.err (!%p81_p12)
}
  0x1c   :  { %s85_s22 = scalar_lea.hbm %s137_s1, 256 }
  0x1d   :  { %p86_p13 = scmp.ne.s32.totalorder %s137_s1, %s85_s22  ;;  %p89_p0 = scmp.lt.u32.totalorder %s85_s22, %s137_s1 }
  0x1f   :  { %p91_p1 = pnand %p89_p0, %p86_p13 }
  0x21   :  { %94 = shalt.err (!%p91_p1)
}
  0x22   :  { %40 = dma.vmem_to_hbm [thread:$0]  %s38_s19, 256, %s137_s1, [#allocation4]  }
  0x23   :  { %97 = dma.done.wait [#allocation4], 256  }
  0x24   :  { %98 = vsyncadd [#allocation4], 4294967040 }
  0x25   :  { %44 = vsyncpa [#allocation3], 1 }
  0x26   :  { %45 = vsyncpa [#allocation4], 1 }

</bundles_post_ra>
